<compile_context>
chip_gen: v7x
topology: tpu7x:2x2x1
jax: 0.10.0
libtpu: 0.0.40
codegen_flags: <defaults>
</compile_context>

<pallas_src>
import math

import jax
import jax.numpy as jnp
from jax import lax
from jax.experimental import pallas as pl
from jax.experimental.pallas import tpu as pltpu


def _round_up(x, m):
    return ((x + m - 1) // m) * m


def _pack_gate_cols(w, hid, hp):
    """(..., 4*hid) -> (..., 4*hp): gate g occupies columns [g*hp, g*hp + hid), zeros elsewhere."""
    if hp == hid:
        return w
    pad = [(0, 0)] * (w.ndim - 1) + [(0, hp - hid)]
    parts = [jnp.pad(w[..., g * hid:(g + 1) * hid], pad) for g in range(4)]
    return jnp.concatenate(parts, axis=-1)


def _make_kernel(hp, tc, last_row):
    """Chunked LSTM kernel: one grid step == tc timesteps of one batch row."""

    def kernel(x_ref, u_ref, hv_ref, c0_ref, out_ref, ht_ref, rt_ref, c_scr):
        # x_ref : (1, tc, Kp)    chunk of timesteps for this batch row (matmul dtype)
        # u_ref : (Kp, 4*hp)     input->gate weights, gate-packed (matmul dtype, 1 buffer)
        # hv_ref: (1, 1, 4*hp)   precomputed H0 @ V + B for this row (f32, gate-packed)
        # c0_ref: (1, 1, hp)     initial cell state for this row (f32, zero-padded)
        # out_ref: (1, tc, hp)   per-step hidden outputs U_t
        # ht_ref, rt_ref: (1,1,hp) final (U_T, R_T) — written only on the last chunk
        # c_scr : (1, hp) f32    cell state carried across chunks
        s = pl.program_id(1)

        @pl.when(s == 0)
        def _init():
            c_scr[...] = c0_ref[0].astype(jnp.float32)

        # One MXU matmul for the whole chunk (there is no recurrence in G because the
        # module never updates H_T inside its time loop).
        x = x_ref[0]                                                   # (tc, Kp)
        g = jnp.dot(x, u_ref[...], preferred_element_type=jnp.float32) + hv_ref[0]

        # Vectorized (over time) gate activations — EUP work, lane-aligned slices.
        n_t = jnp.tanh(g[:, 0:hp])
        i_t = jax.nn.sigmoid(g[:, hp:2 * hp])
        f_t = jax.nn.sigmoid(g[:, 2 * hp:3 * hp])
        o_t = jax.nn.sigmoid(g[:, 3 * hp:4 * hp])
        l_t = n_t * i_t

        # Log-depth (Hillis–Steele) inclusive prefix product over time (axis 0):
        #   p[t] = prod_{s<=t} f_t[s].  roll() is XLU work, the multiply is VPU work,
        # and the whole scan is ~log2(tc) full-tile ops instead of tc serial row ops.
        t_idx = lax.broadcasted_iota(jnp.int32, (tc, hp), 0)
        p = f_t
        k = 1
        while k < tc:                      # static Python loop -> unrolled at trace time
            shifted = pltpu.roll(p, shift=k, axis=0)      # shifted[t] = p[t - k] (wraps)
            p = p * jnp.where(t_idx < k, 1.0, shifted)    # identity where the wrap lands
            k *= 2

        c_seq = p * c_scr[...]                            # (tc, hp) = C_t sequence
        c_scr[...] = c_seq[tc - 1:tc, :]                  # carry into the next chunk

        r_t = c_seq + l_t
        u_t = jnp.tanh(r_t) * o_t
        out_ref[0] = u_t.astype(out_ref.dtype)

        @pl.when(s == pl.num_programs(1) - 1)
        def _final():
            # last_row is the static index of the last *real* timestep inside the
            # (possibly zero-padded) final chunk.
            ht_ref[0] = u_t[last_row:last_row + 1, :].astype(ht_ref.dtype)
            rt_ref[0] = r_t[last_row:last_row + 1, :].astype(rt_ref.dtype)

    return kernel


def lstm_forward(inp, U, V, B, H0, C0, *, time_chunk=128, matmul_dtype=jnp.bfloat16):
    """inp: (batch, seq, in_dims).  Returns (output (hid, seq*batch), (U_T, R_T))."""
    batch, seq, in_dims = inp.shape
    hid = H0.shape[1]
    dtype = inp.dtype

    # --- static tiling / padding choices -------------------------------------------
    hp = _round_up(hid, 128)            # lane-dense gate / output width
    kp = _round_up(in_dims, 128)        # lane-dense contraction width
    tc = min(_round_up(seq, 16), max(16, _round_up(time_chunk, 16)))
    num_chunks = pl.cdiv(seq, tc)
    seq_pad = num_chunks * tc
    last_row = (seq - 1) % tc

    # --- wrapper-side data prep -----------------------------------------------------
    # x: pad time (to chunk multiple) and features (to lane multiple); cast for the MXU.
    x = jnp.pad(inp, ((0, 0), (0, seq_pad - seq), (0, kp - in_dims))).astype(matmul_dtype)

    # U: pad contraction rows, pack gate columns to lane-aligned offsets, cast for MXU.
    u_p = _pack_gate_cols(jnp.pad(U, ((0, kp - in_dims), (0, 0))), hid, hp).astype(matmul_dtype)

    # H_T is never updated by the module's loop -> the recurrent term is constant per
    # batch row.  Compute H0 @ V + B once (tiny XLA matmul) and keep it in f32.
    hv = (jnp.dot(H0.astype(jnp.float32), V.astype(jnp.float32),
                  preferred_element_type=jnp.float32) + B.astype(jnp.float32))
    hv = _pack_gate_cols(hv, hid, hp).reshape(batch, 1, 4 * hp)

    c0 = jnp.pad(C0.astype(jnp.float32), ((0, 0), (0, hp - hid))).reshape(batch, 1, hp)

    # --- explicit VMEM budget (generation-aware clamp) -------------------------------
    mm_bytes = jnp.dtype(matmul_dtype).itemsize
    out_bytes = jnp.dtype(dtype).itemsize
    needed = (
        kp * 4 * hp * mm_bytes                 # U, single-buffered
        + 2 * tc * kp * mm_bytes               # x chunk, double-buffered
        + 2 * (4 * hp + hp) * 4                # hv + c0
        + 2 * tc * hp * out_bytes              # out chunk, double-buffered
        + 4 * hp * out_bytes                   # final U_T / R_T blocks
        + hp * 4                               # cell-state carry scratch
        + (4 * hp + 20 * hp) * tc * 4          # g + elementwise temporaries (f32)
    )
    # >= 32 MiB to keep big chunks on v6e; <= 56 MiB to stay under v7x's 64 MiB VMEM.
    vmem_limit_bytes = int(min(56 * 2 ** 20, max(32 * 2 ** 20, 2 * needed)))

    kernel = _make_kernel(hp, tc, last_row)

    grid_spec = pltpu.PrefetchScalarGridSpec(
        num_scalar_prefetch=0,
        grid=(batch, num_chunks),            # batch rows independent, chunks sequential
        in_specs=[
            pl.BlockSpec((1, tc, kp), lambda b, s: (b, s, 0)),           # x chunk
            pl.BlockSpec((kp, 4 * hp), lambda b, s: (0, 0),
                         pipeline_mode=pl.Buffered(1)),                  # U (resident, 1 buf)
            pl.BlockSpec((1, 1, 4 * hp), lambda b, s: (b, 0, 0)),        # H0@V + B (this row)
            pl.BlockSpec((1, 1, hp), lambda b, s: (b, 0, 0)),            # C0 (this row)
        ],
        out_specs=[
            pl.BlockSpec((1, tc, hp), lambda b, s: (b, s, 0)),           # U_t sequence
            pl.BlockSpec((1, 1, hp), lambda b, s: (b, 0, 0)),            # final U_T
            pl.BlockSpec((1, 1, hp), lambda b, s: (b, 0, 0)),            # final R_T
        ],
        scratch_shapes=[
            pltpu.VMEM((1, hp), jnp.float32),   # carried cell state C
        ],
    )

    out_seq, u_last, r_last = pl.pallas_call(
        kernel,
        out_shape=(
            jax.ShapeDtypeStruct((batch, seq_pad, hp), dtype),
            jax.ShapeDtypeStruct((batch, 1, hp), dtype),
            jax.ShapeDtypeStruct((batch, 1, hp), dtype),
        ),
        grid_spec=grid_spec,
        compiler_params=pltpu.CompilerParams(
            # Batch rows are fully independent -> shard across TensorCores; only the
            # time-chunk axis carries the (cheap) cell-state dependency.
            dimension_semantics=("parallel", "arbitrary"),
            vmem_limit_bytes=vmem_limit_bytes,
        ),
    )(x, u_p, hv, c0)

    # Module semantics: torch.cat over time of (batch, hid) -> (seq*batch, hid); then .T.
    # Single transpose -> reshape (one HBM pass over the output).
    output = jnp.transpose(out_seq[:, :seq, :hid], (2, 1, 0)).reshape(hid, seq * batch)
    return output, (u_last[:, 0, :hid], r_last[:, 0, :hid])


def lstm_ref(inp, U, V, B, H0, C0):
    """Pure-JAX reference mirroring the PyTorch forward exactly."""
    batch, seq, _ = inp.shape
    hid = H0.shape[1]
    H, C = H0, C0
    outs = []
    for t in range(seq):
        x = inp[:, t, :]
        g = x @ U + H @ V + B
        n = jnp.tanh(g[:, :hid])
        i = jax.nn.sigmoid(g[:, hid:2 * hid])
        l = n * i
        f = jax.nn.sigmoid(g[:, 2 * hid:3 * hid])
        C = C * f
        r = C + l
        o = jax.nn.sigmoid(g[:, 3 * hid:])
        u = jnp.tanh(r) * o
        outs.append(u)
    out = jnp.concatenate(outs, axis=0).T
    return out, (u, r)


if __name__ == "__main__":
    batch, seq = 2, 8
    in_dims, hid_dims, out_dims = 16, 32, 32   # out_dims unused by the module's forward

    key = jax.random.PRNGKey(0)
    k_u, k_v, k_b, k_x, k_h, k_c = jax.random.split(key, 6)

    stdv = 1.0 / math.sqrt(hid_dims)
    U = jax.random.uniform(k_u, (in_dims, 4 * hid_dims), jnp.float32, -stdv, stdv)
    V = jax.random.uniform(k_v, (hid_dims, 4 * hid_dims), jnp.float32, -stdv, stdv)
    B = jax.random.uniform(k_b, (4 * hid_dims,), jnp.float32, -stdv, stdv)

    inp = jax.random.normal(k_x, (batch, seq, in_dims), jnp.float32)
    H0 = jax.random.normal(k_h, (batch, hid_dims), jnp.float32)
    C0 = jax.random.normal(k_c, (batch, hid_dims), jnp.float32)

    out_ref_, (u_ref_, r_ref_) = lstm_ref(inp, U, V, B, H0, C0)

    # Exact-precision path (f32 matmul operands) — tight tolerance.
    out32, (u32, r32) = lstm_forward(inp, U, V, B, H0, C0, matmul_dtype=jnp.float32)
    jax.block_until_ready((out32, u32, r32))
    assert out32.shape == (hid_dims, seq * batch)
    assert jnp.allclose(out32, out_ref_, atol=1e-5), "f32 output mismatch"
    assert jnp.allclose(u32, u_ref_, atol=1e-5), "f32 U_T mismatch"
    assert jnp.allclose(r32, r_ref_, atol=1e-5), "f32 R_T mismatch"

    # Default fast path (bf16 matmul operands, f32 accumulation) — looser tolerance.
    out16, (u16, r16) = lstm_forward(inp, U, V, B, H0, C0)
    jax.block_until_ready((out16, u16, r16))
    assert out16.shape == (hid_dims, seq * batch)
    assert jnp.allclose(out16, out_ref_, atol=3e-2), "bf16 output mismatch"
    assert jnp.allclose(u16, u_ref_, atol=3e-2), "bf16 U_T mismatch"
    assert jnp.allclose(r16, r_ref_, atol=3e-2), "bf16 R_T mismatch"

    print("KERNEL_OK")
</pallas_src>

<mosaic_0001>
module attributes {stable_mosaic.version = 11 : i64} {
  func.func @kernel(%arg0: i32, %arg1: i32, %arg2: memref<1x16x128xf32, #tpu.memory_space<vmem>>, %arg3: memref<128x512xf32, #tpu.memory_space<vmem>>, %arg4: memref<1x1x512xf32, #tpu.memory_space<vmem>>, %arg5: memref<1x1x128xf32, #tpu.memory_space<vmem>>, %arg6: memref<1x16x128xf32, #tpu.memory_space<vmem>>, %arg7: memref<1x1x128xf32, #tpu.memory_space<vmem>>, %arg8: memref<1x1x128xf32, #tpu.memory_space<vmem>>, %arg9: memref<1x128xf32, #tpu.memory_space<vmem>>) attributes {dimension_semantics = [#tpu.dimension_semantics<parallel>, #tpu.dimension_semantics<arbitrary>], iteration_bounds = array<i64: 2, 1>, scalar_prefetch = 0 : i64, scratch_operands = 1 : i64, tpu.core_type = #tpu.core_type<tc>, window_params = [{transform_indices = @transform_0, window_bounds = array<i64: 1, 16, 128>}, {pipeline_mode = #tpu.pipeline_mode<synchronous>, transform_indices = @transform_1, window_bounds = array<i64: 128, 512>}, {transform_indices = @transform_2, window_bounds = array<i64: 1, 1, 512>}, {transform_indices = @transform_3, window_bounds = array<i64: 1, 1, 128>}, {transform_indices = @transform_4, window_bounds = array<i64: 1, 16, 128>}, {transform_indices = @transform_5, window_bounds = array<i64: 1, 1, 128>}, {transform_indices = @transform_6, window_bounds = array<i64: 1, 1, 128>}]} {
    %c0_i32 = arith.constant 0 : i32
    %0 = arith.cmpi eq, %arg1, %c0_i32 : i32
    %1 = arith.extui %0 : i1 to i32
    %c0_i32_0 = arith.constant 0 : i32
    %2 = arith.cmpi ne, %1, %c0_i32_0 : i32
    scf.if %2 {
      %c0_28 = arith.constant 0 : index
      %c0_29 = arith.constant 0 : index
      %c0_30 = arith.constant 0 : index
      %71 = vector.load %arg5[%c0_28, %c0_29, %c0_30] : memref<1x1x128xf32, #tpu.memory_space<vmem>>, vector<1x1x128xf32>
      %72 = vector.shape_cast %71 : vector<1x1x128xf32> to vector<1x128xf32>
      %c0_31 = arith.constant 0 : index
      %c0_32 = arith.constant 0 : index
      %73 = vector.load %arg9[%c0_31, %c0_32] : memref<1x128xf32, #tpu.memory_space<vmem>>, vector<1x128xf32>
      tpu.vector_store %arg9[%c0_31, %c0_32], %72 {strides = array<i32>} : memref<1x128xf32, #tpu.memory_space<vmem>>, vector<1x128xf32>,
    } else {
    }
    %c0 = arith.constant 0 : index
    %c0_1 = arith.constant 0 : index
    %c0_2 = arith.constant 0 : index
    %3 = vector.load %arg2[%c0, %c0_1, %c0_2] : memref<1x16x128xf32, #tpu.memory_space<vmem>>, vector<1x16x128xf32>
    %4 = vector.shape_cast %3 : vector<1x16x128xf32> to vector<16x128xf32>
    %c0_3 = arith.constant 0 : index
    %c0_4 = arith.constant 0 : index
    %5 = vector.load %arg3[%c0_3, %c0_4] : memref<128x512xf32, #tpu.memory_space<vmem>>, vector<128x512xf32>
    %cst = arith.constant dense<0.000000e+00> : vector<16x512xf32>
    %6 = tpu.matmul %4, %5, %cst {dimension_numbers = #tpu.dot_dimension_numbers<[1], [0], [0], [1], [0, 0, 1, 1], [], []>} : vector<16x128xf32>, vector<128x512xf32>, vector<16x512xf32> -> vector<16x512xf32>
    %c0_5 = arith.constant 0 : index
    %c0_6 = arith.constant 0 : index
    %c0_7 = arith.constant 0 : index
    %7 = vector.load %arg4[%c0_5, %c0_6, %c0_7] : memref<1x1x512xf32, #tpu.memory_space<vmem>>, vector<1x1x512xf32>
    %8 = vector.shape_cast %7 : vector<1x1x512xf32> to vector<1x512xf32>
    %9 = vector.broadcast %8 : vector<1x512xf32> to vector<16x512xf32>
    %10 = arith.addf %6, %9 : vector<16x512xf32>
    %11 = vector.extract_strided_slice %10 {offsets = [0, 0], sizes = [16, 128], strides = [1, 1]} : vector<16x512xf32> to vector<16x128xf32>
    %12 = math.tanh %11 : vector<16x128xf32>
    %13 = vector.extract_strided_slice %10 {offsets = [0, 128], sizes = [16, 128], strides = [1, 1]} : vector<16x512xf32> to vector<16x128xf32>
    %14 = arith.negf %13 : vector<16x128xf32>
    %15 = math.exp %14 : vector<16x128xf32>
    %cst_8 = arith.constant 1.000000e+00 : f32
    %16 = vector.broadcast %cst_8 : f32 to vector<16x128xf32>
    %17 = arith.addf %16, %15 : vector<16x128xf32>
    %18 = arith.divf %16, %17 : vector<16x128xf32>
    %19 = vector.extract_strided_slice %10 {offsets = [0, 256], sizes = [16, 128], strides = [1, 1]} : vector<16x512xf32> to vector<16x128xf32>
    %20 = arith.negf %19 : vector<16x128xf32>
    %21 = math.exp %20 : vector<16x128xf32>
    %cst_9 = arith.constant 1.000000e+00 : f32
    %22 = vector.broadcast %cst_9 : f32 to vector<16x128xf32>
    %23 = arith.addf %22, %21 : vector<16x128xf32>
    %24 = arith.divf %22, %23 : vector<16x128xf32>
    %25 = vector.extract_strided_slice %10 {offsets = [0, 384], sizes = [16, 128], strides = [1, 1]} : vector<16x512xf32> to vector<16x128xf32>
    %26 = arith.negf %25 : vector<16x128xf32>
    %27 = math.exp %26 : vector<16x128xf32>
    %cst_10 = arith.constant 1.000000e+00 : f32
    %28 = vector.broadcast %cst_10 : f32 to vector<16x128xf32>
    %29 = arith.addf %28, %27 : vector<16x128xf32>
    %30 = arith.divf %28, %29 : vector<16x128xf32>
    %31 = arith.mulf %12, %18 : vector<16x128xf32>
    %32 = tpu.iota {dimensions = array<i32: 0>} : vector<16x128xi32>
    %c1_i32 = arith.constant 1 : i32
    %33 = tpu.dynamic_rotate %24 by %c1_i32 dim 0 : vector<16x128xf32>, i32 -> vector<16x128xf32>
    %c1_i32_11 = arith.constant 1 : i32
    %34 = vector.broadcast %c1_i32_11 : i32 to vector<16x128xi32>
    %35 = arith.cmpi slt, %32, %34 : vector<16x128xi32>
    %cst_12 = arith.constant 1.000000e+00 : f32
    %36 = vector.broadcast %cst_12 : f32 to vector<16x128xf32>
    %37 = arith.select %35, %36, %33 : vector<16x128xi1>, vector<16x128xf32>
    %38 = arith.mulf %24, %37 : vector<16x128xf32>
    %c2_i32 = arith.constant 2 : i32
    %39 = tpu.dynamic_rotate %38 by %c2_i32 dim 0 : vector<16x128xf32>, i32 -> vector<16x128xf32>
    %c2_i32_13 = arith.constant 2 : i32
    %40 = vector.broadcast %c2_i32_13 : i32 to vector<16x128xi32>
    %41 = arith.cmpi slt, %32, %40 : vector<16x128xi32>
    %cst_14 = arith.constant 1.000000e+00 : f32
    %42 = vector.broadcast %cst_14 : f32 to vector<16x128xf32>
    %43 = arith.select %41, %42, %39 : vector<16x128xi1>, vector<16x128xf32>
    %44 = arith.mulf %38, %43 : vector<16x128xf32>
    %c4_i32 = arith.constant 4 : i32
    %45 = tpu.dynamic_rotate %44 by %c4_i32 dim 0 : vector<16x128xf32>, i32 -> vector<16x128xf32>
    %c4_i32_15 = arith.constant 4 : i32
    %46 = vector.broadcast %c4_i32_15 : i32 to vector<16x128xi32>
    %47 = arith.cmpi slt, %32, %46 : vector<16x128xi32>
    %cst_16 = arith.constant 1.000000e+00 : f32
    %48 = vector.broadcast %cst_16 : f32 to vector<16x128xf32>
    %49 = arith.select %47, %48, %45 : vector<16x128xi1>, vector<16x128xf32>
    %50 = arith.mulf %44, %49 : vector<16x128xf32>
    %c8_i32 = arith.constant 8 : i32
    %51 = tpu.dynamic_rotate %50 by %c8_i32 dim 0 : vector<16x128xf32>, i32 -> vector<16x128xf32>
    %c8_i32_17 = arith.constant 8 : i32
    %52 = vector.broadcast %c8_i32_17 : i32 to vector<16x128xi32>
    %53 = arith.cmpi slt, %32, %52 : vector<16x128xi32>
    %cst_18 = arith.constant 1.000000e+00 : f32
    %54 = vector.broadcast %cst_18 : f32 to vector<16x128xf32>
    %55 = arith.select %53, %54, %51 : vector<16x128xi1>, vector<16x128xf32>
    %56 = arith.mulf %50, %55 : vector<16x128xf32>
    %c0_19 = arith.constant 0 : index
    %c0_20 = arith.constant 0 : index
    %57 = vector.load %arg9[%c0_19, %c0_20] : memref<1x128xf32, #tpu.memory_space<vmem>>, vector<1x128xf32>
    %58 = vector.broadcast %57 : vector<1x128xf32> to vector<16x128xf32>
    %59 = arith.mulf %56, %58 : vector<16x128xf32>
    %60 = vector.extract_strided_slice %59 {offsets = [15, 0], sizes = [1, 128], strides = [1, 1]} : vector<16x128xf32> to vector<1x128xf32>
    %c0_21 = arith.constant 0 : index
    %c0_22 = arith.constant 0 : index
    %61 = vector.load %arg9[%c0_21, %c0_22] : memref<1x128xf32, #tpu.memory_space<vmem>>, vector<1x128xf32>
    tpu.vector_store %arg9[%c0_21, %c0_22], %60 {strides = array<i32>} : memref<1x128xf32, #tpu.memory_space<vmem>>, vector<1x128xf32>,
    %62 = arith.addf %59, %31 : vector<16x128xf32>
    %63 = math.tanh %62 : vector<16x128xf32>
    %64 = arith.mulf %63, %30 : vector<16x128xf32>
    %c0_23 = arith.constant 0 : index
    %c0_24 = arith.constant 0 : index
    %c0_25 = arith.constant 0 : index
    %65 = vector.load %arg6[%c0_23, %c0_24, %c0_25] : memref<1x16x128xf32, #tpu.memory_space<vmem>>, vector<1x16x128xf32>
    %66 = vector.shape_cast %65 : vector<1x16x128xf32> to vector<16x128xf32>
    %67 = vector.shape_cast %64 : vector<16x128xf32> to vector<1x16x128xf32>
    tpu.vector_store %arg6[%c0_23, %c0_24, %c0_25], %67 {strides = array<i32>} : memref<1x16x128xf32, #tpu.memory_space<vmem>>, vector<1x16x128xf32>,
    %c0_i32_26 = arith.constant 0 : i32
    %68 = arith.cmpi eq, %arg1, %c0_i32_26 : i32
    %69 = arith.extui %68 : i1 to i32
    %c0_i32_27 = arith.constant 0 : i32
    %70 = arith.cmpi ne, %69, %c0_i32_27 : i32
    scf.if %70 {
      %71 = vector.extract_strided_slice %64 {offsets = [7, 0], sizes = [1, 128], strides = [1, 1]} : vector<16x128xf32> to vector<1x128xf32>
      %c0_28 = arith.constant 0 : index
      %c0_29 = arith.constant 0 : index
      %c0_30 = arith.constant 0 : index
      %72 = vector.load %arg7[%c0_28, %c0_29, %c0_30] : memref<1x1x128xf32, #tpu.memory_space<vmem>>, vector<1x1x128xf32>
      %73 = vector.shape_cast %72 : vector<1x1x128xf32> to vector<1x128xf32>
      %74 = vector.shape_cast %71 : vector<1x128xf32> to vector<1x1x128xf32>
      tpu.vector_store %arg7[%c0_28, %c0_29, %c0_30], %74 {strides = array<i32>} : memref<1x1x128xf32, #tpu.memory_space<vmem>>, vector<1x1x128xf32>,
      %75 = vector.extract_strided_slice %62 {offsets = [7, 0], sizes = [1, 128], strides = [1, 1]} : vector<16x128xf32> to vector<1x128xf32>
      %c0_31 = arith.constant 0 : index
      %c0_32 = arith.constant 0 : index
      %c0_33 = arith.constant 0 : index
      %76 = vector.load %arg8[%c0_31, %c0_32, %c0_33] : memref<1x1x128xf32, #tpu.memory_space<vmem>>, vector<1x1x128xf32>
      %77 = vector.shape_cast %76 : vector<1x1x128xf32> to vector<1x128xf32>
      %78 = vector.shape_cast %75 : vector<1x128xf32> to vector<1x1x128xf32>
      tpu.vector_store %arg8[%c0_31, %c0_32, %c0_33], %78 {strides = array<i32>} : memref<1x1x128xf32, #tpu.memory_space<vmem>>, vector<1x1x128xf32>,
    } else {
    }
    return
  }
  func.func @transform_0(%arg0: i32, %arg1: i32) -> (i32, i32, i32) {
    %c0_i32 = arith.constant 0 : i32
    %c0_i32_0 = arith.constant 0 : i32
    return %arg0, %arg1, %c0_i32 : i32, i32, i32
  }
  func.func @transform_1(%arg0: i32, %arg1: i32) -> (i32, i32) {
    %c0_i32 = arith.constant 0 : i32
    %c0_i32_0 = arith.constant 0 : i32
    %c0_i32_1 = arith.constant 0 : i32
    return %c0_i32, %c0_i32_0 : i32, i32
  }
  func.func @transform_2(%arg0: i32, %arg1: i32) -> (i32, i32, i32) {
    %c0_i32 = arith.constant 0 : i32
    %c0_i32_0 = arith.constant 0 : i32
    %c0_i32_1 = arith.constant 0 : i32
    return %arg0, %c0_i32, %c0_i32_0 : i32, i32, i32
  }
  func.func @transform_3(%arg0: i32, %arg1: i32) -> (i32, i32, i32) {
    %c0_i32 = arith.constant 0 : i32
    %c0_i32_0 = arith.constant 0 : i32
    %c0_i32_1 = arith.constant 0 : i32
    return %arg0, %c0_i32, %c0_i32_0 : i32, i32, i32
  }
  func.func @transform_4(%arg0: i32, %arg1: i32) -> (i32, i32, i32) {
    %c0_i32 = arith.constant 0 : i32
    %c0_i32_0 = arith.constant 0 : i32
    return %arg0, %arg1, %c0_i32 : i32, i32, i32
  }
  func.func @transform_5(%arg0: i32, %arg1: i32) -> (i32, i32, i32) {
    %c0_i32 = arith.constant 0 : i32
    %c0_i32_0 = arith.constant 0 : i32
    %c0_i32_1 = arith.constant 0 : i32
    return %arg0, %c0_i32, %c0_i32_0 : i32, i32, i32
  }
  func.func @transform_6(%arg0: i32, %arg1: i32) -> (i32, i32, i32) {
    %c0_i32 = arith.constant 0 : i32
    %c0_i32_0 = arith.constant 0 : i32
    %c0_i32_1 = arith.constant 0 : i32
    return %arg0, %c0_i32, %c0_i32_0 : i32, i32, i32
  }
}

</mosaic_0001>

<bundles_post_ra>
// kernel: tpu_custom_call.1
= control target key start
LH: loop header
LB: loop body
LE: loop exit
PB: predicated region body
PF: predicated region fallthrough
CT: control target
= control target key end

     0   :  { %s1828_s0 = inlined_call_operand.hbm [shape: f32[2,16,128], index: 0, kind: input, shape index: {}]   ;;  %s1829_s1 = inlined_call_operand.hbm [shape: f32[128,512], index: 1, kind: input, shape index: {}]   ;;  %s1830_s2 = inlined_call_operand.hbm [shape: f32[2,1,512], index: 2, kind: input, shape index: {}]   ;;  %s1831_s3 = inlined_call_operand.vmem [shape: f32[2,1,128], index: 3, kind: input, shape index: {}]   ;;  %s1832_s4 = inlined_call_operand.hbm [shape: f32[2,16,128], index: 4, kind: output, shape index: {0}]   ;;  %s1833_s5 = inlined_call_operand.hbm [shape: f32[2,1,128], index: 5, kind: output, shape index: {1}]   ;;  %s1834_s6 = inlined_call_operand.hbm [shape: f32[2,1,128], index: 6, kind: output, shape index: {2}]  }
   0x1   :  { %1846 = sst [smem:[#allocation22_spill]] %s1828_s0 }
   0x2   :  { %12 = vsyncpa [#allocation4], 0 }
   0x3   :  { %14 = vsyncpa [#allocation4 + $0x1], 0 }
   0x4   :  { %15 = vsyncpa [#allocation7], 0 }
   0x5   :  { %16 = vsyncpa [#allocation5], 0 }
   0x6   :  { %18 = vsyncpa [#allocation5 + $0x1], 0 }
   0x7   :  { %19 = vsyncpa [#allocation11], 0 }
   0x8   :  { %21 = vsyncpa [#allocation11 + $0x1], 0  ;;  %s1461_s21 = smov 0   ;;  %s1463_s22 = smov 0  }
   0x9   :  { %s1465_s23 = smov 0   ;;  %s1467_s24 = smov 0  }
   0xa   :  { %s1469_s25 = smov 0   ;;  %s1471_s26 = smov 0  }
   0xb LB: > { %1847 = sst [smem:[#allocation18_spill]] %s1399_s23  ;;  %s39_s27 = sadd.s32 1, %s1407_s25  ;;  %s1411_s26 = sphi %s1471_s26, %s27_s26   ;;  %s1407_s25 = sphi %s1469_s25, %s1872_s25   ;;  %s1403_s24 = sphi %s1467_s24, %s1871_s24   ;;  %s1399_s23 = sphi %s1465_s23, %s1870_s23   ;;  %s1395_s22 = sphi %s1463_s22, %s1874_s22   ;;  %s1391_s21 = sphi %s1461_s21, %s1873_s21  }
   0xc   : > { %1848 = sst [smem:[#allocation19_spill]] %s1407_s25  ;;  %s48_s28 = sadd.s32 1, %s1399_s23 }
   0xd   : > { %p41_p0 = scmp.ge.s32.totalorder %s39_s27, 2  ;;  %p55_p1 = scmp.ne.s32.totalorder %s1399_s23, %s1395_s22 }
   0xe   : > { %p56_p2 = scmp.eq.s32.totalorder %s1411_s26, 0  ;;  %p1082_p5 = scmp.lt.s32.totalorder %s1411_s26, 2 }
   0xf   : > { %s1876_s27 = smov (%p41_p0, %s39_s27), 0  ;;  %s251_s30 = sand.u32 1, %s1411_s26  }
  0x10   : > { %1849 = sst [smem:[#allocation20_spill]] %s1876_s27  ;;  %p57_p4 = por %p56_p2, %p55_p1 }
  0x11   : > { %s43_s29 = ssub.s32 %s1407_s25, %s1876_s27  ;;  %s253_s7 = sand.u32 1, %s1399_s23  }
  0x12   : > { %p46_p6 = scmp.eq.s32.totalorder %s43_s29, 0  ;;  %s979_s8 = sshll.u32 %s1407_s25, 8 }
  0x13   : > { %s954_s10 = sshll.u32 %s253_s7, 4  ;;  %s1851_s0 = sld [smem:[#allocation22_spill]] }
  0x14   : > { %s1509_s9 = scalar_select %p46_p6, %s1399_s23, %s48_s28  }
  0x15   : > { %p1518_p7 = pnand %p1082_p5, %p57_p4  ;;  %s255_s15 = scalar_lea.vmem [#allocation3], %s954_s10 }
  0x16   : > { %1850 = sst [smem:[#allocation21_spill]] %s1509_s9  ;;  %s264_s16 = sshll.u32 %s255_s15, 4  ;;  %s1522_s16 = int_to_ptr.vmem [resolvable:$true] %s264_s16 }
  0x17   : > { %s1852_s14 = scalar_select %p1518_p7, 1, 0 }
  0x18   : > { %s1524_s17 = scalar_lea.sflag [#allocation4], %s251_s30  ;;  %p1840_p9 = pneg %p1518_p7 }
  0x19   : > { %s1516_s13 = scalar_lea.hbm %s1851_s0, %s979_s8  ;;  %s1178_s28 = scalar_lea.hbm %s1851_s0, 512 }
  0x1a   : > { %s1173_s18 = scalar_lea.hbm %s1516_s13, 256  ;;  %p1179_p12 = scmp.lt.u32.totalorder %s1516_s13, %s1851_s0 }
  0x1b   : > { %p1174_p8 = scmp.ne.s32.totalorder %s1516_s13, %s1173_s18  ;;  %p1180_p13 = scmp.lt.u32.totalorder %s1178_s28, %s1173_s18 }
  0x1c   : > { %p1182_p2 = scmp.lt.u32.totalorder %s1173_s18, %s1516_s13 }
  0x1d   : > { %p1176_p10 = pnand %p1840_p9, %p1174_p8  ;;  %p1181_p0 = por %p1180_p13, %p1179_p12 }
  0x1f   : > { %p1177_p11 = pneg %p1176_p10  ;;  %p1183_p4 = por %p1182_p2, %p1181_p0 }
  0x21   : > { %p1184_p5 = pnand %p1183_p4, %p1177_p11 }
  0x23   : > { %1187 = shalt.err (!%p1184_p5)
}
  0x24   : > { %s1188_s30 = scalar_lea.vmem %s1522_s16, 256  ;;  %s1413_s10 = smov [#allocation3]  }
  0x25   : > { %p1189_p6 = scmp.ne.s32.totalorder %s1522_s16, %s1188_s30  ;;  %s1193_s11 = sshll.u32 %s1413_s10, 4  ;;  %s1194_s11 = int_to_ptr.vmem [resolvable:$false] %s1193_s11 }
  0x26   : > { %s1195_s12 = scalar_lea.vmem %s1194_s11, 512  ;;  %p1196_p3 = scmp.lt.s32.totalorder %s1522_s16, %s1194_s11 }
  0x27   : > { %p1191_p8 = pnand %p1189_p6, %p1840_p9  ;;  %p1197_p12 = scmp.lt.s32.totalorder %s1195_s12, %s1188_s30 }
  0x29   : > { %p1192_p10 = pneg %p1191_p8  ;;  %p1198_p13 = por %p1197_p12, %p1196_p3 }
  0x2b   : > { %p1199_p0 = pnand %p1198_p13, %p1192_p10 }
  0x2d   : > { %1202 = shalt.err (!%p1199_p0)
}
  0x2e   : > { %s1414_s15 = smov 128   ;;  %s1415_s18 = smov 8  }
  0x2f   : > { %1067 = dma.hbm_to_vmem [thread:$0]  (!%p1518_p7), %s1516_s13, 256, %s1522_s16, %s1524_s17, %s1414_s15, %s1414_s15, %s1415_s18  }
  0x30   : > { %s1553_s19 = sadd.s32 4294967295, %s1411_s26   ;;  %s1835_s20 = sadd.s32 4294967294, %s1411_s26  }
  0x31   : > { %p61_p3 = scmp.ne.s32.totalorder %s1395_s22, %s1391_s21  ;;  %p1839_p11 = scmp.eq.s32.totalorder %s1553_s19, 0 }
  0x32   : > { %p160_p2 = scmp.eq.s32.totalorder %s1553_s19, 1  ;;  %p166_p4 = scmp.eq.s32.totalorder %s1835_s20, 1 }
  0x33   : > { %p951_p5 = scmp.ge.s32.totalorder %s1411_s26, 1  ;;  %p1565_p6 = por %p1839_p11, %p61_p3 }
  0x34   : > { %p1572_p8 = por %p160_p2, %p55_p1  ;;  %p1576_p10 = por %p166_p4, %p61_p3 }
  0x35   : > { %s1853_s28 = scalar_select %p1565_p6, 1, 0 }
  0x36   : > { %s1854_s13 = scalar_select %p1572_p8, 1, 0 }
  0x37   : > { %s1855_s16 = scalar_select %p1576_p10, 1, 0 }
  0x38   : > { %p225_p12 = scmp.lt.s32.totalorder %s1411_s26, 3  ;;  %s1416_s8 = smov [#allocation6]  }
  0x39   : > { %s237_s30 = sshll.u32 %s1416_s8, 4  ;;  %s957_s10 = sshll.u32 %s253_s7, 2  ;;  %s1585_s30 = int_to_ptr.vmem [resolvable:$true] %s237_s30 }
  0x3a   : > { %p1581_p13 = pnand %p951_p5, %p225_p12  ;;  %s980_s11 = sshll.u32 %s1407_s25, 6 }
  0x3b   : > { %s1601_s20 = scalar_lea.hbm %s1830_s2, %s980_s11  ;;  %s278_s0 = scalar_lea.vmem [#allocation8], %s957_s10 }
  0x3c   : > { %s1856_s29 = scalar_select %p1581_p13, 1, 0 }
  0x3d   : > { %p1060_p0 = pneg %p1581_p13  ;;  %s286_s8 = sshll.u32 %s278_s0, 4  ;;  %s1603_s8 = int_to_ptr.vmem [resolvable:$true] %s286_s8 }
  0x3e   : > { %s1203_s7 = scalar_lea.hbm %s1829_s1, 8192 }
  0x3f   : > { %p1594_p1 = pnand %p1060_p0, %p1839_p11  ;;  %p1204_p3 = scmp.ne.s32.totalorder %s1829_s1, %s1203_s7 }
  0x40   : > { %p1210_p12 = scmp.lt.u32.totalorder %s1203_s7, %s1829_s1 }
  0x41   : > { %p1205_p2 = pneg %p1594_p1 }
  0x43   : > { %p1206_p4 = pnand %p1205_p2, %p1204_p3 }
  0x45   : > { %p1207_p5 = pneg %p1206_p4 }
  0x47   : > { %p1212_p0 = pnand %p1210_p12, %p1207_p5 }
  0x49   : > { %1215 = shalt.err (!%p1212_p0)
}
  0x4a   : > { %s1216_s0 = scalar_lea.vmem %s1585_s30, 8192  ;;  %p1224_p8 = scmp.lt.s32.totalorder %s1585_s30, %s1585_s30 }
  0x4b   : > { %p1217_p11 = scmp.ne.s32.totalorder %s1585_s30, %s1216_s0  ;;  %p1225_p6 = scmp.lt.s32.totalorder %s1216_s0, %s1216_s0 }
  0x4d   : > { %p1219_p9 = pnand %p1217_p11, %p1205_p2  ;;  %p1226_p13 = por %p1225_p6, %p1224_p8 }
  0x4f   : > { %p1220_p10 = pneg %p1219_p9 }
  0x51   : > { %p1227_p7 = pnand %p1226_p13, %p1220_p10 }
  0x53   : > { %1230 = shalt.err (!%p1227_p7)
}
  0x54   : > { %s1417_s23 = smov 512   ;;  %s1418_s25 = smov 32  }
  0x55   : > { %1063 = dma.hbm_to_vmem [thread:$0]  (!%p1594_p1), %s1829_s1, 8192, %s1585_s30, [#allocation7], %s1417_s23, %s1417_s23, %s1418_s25  }
  0x56   : > { %s1231_s10 = scalar_lea.hbm %s1601_s20, 64  ;;  %p1858_p11 = scmp.ne.s32.totalorder %s1852_s14, 0 }
  0x57   : > { %p1232_p9 = scmp.ne.s32.totalorder %s1601_s20, %s1231_s10  ;;  %s1236_s15 = scalar_lea.hbm %s1830_s2, 128 }
  0x58   : > { %p1859_p6 = pneg %p1858_p11  ;;  %p1237_p10 = scmp.lt.u32.totalorder %s1601_s20, %s1830_s2 }
  0x59   : > { %p1238_p13 = scmp.lt.u32.totalorder %s1236_s15, %s1231_s10  ;;  %p1240_p2 = scmp.lt.u32.totalorder %s1231_s10, %s1601_s20 }
  0x5a   : > { %p1234_p8 = pnand %p1232_p9, %p1859_p6 }
  0x5b   : > { %p1239_p3 = por %p1238_p13, %p1237_p10 }
  0x5c   : > { %p1235_p7 = pneg %p1234_p8 }
  0x5d   : > { %p1241_p4 = por %p1240_p2, %p1239_p3 }
  0x5f   : > { %p1242_p5 = pnand %p1241_p4, %p1235_p7 }
  0x61   : > { %1245 = shalt.err (!%p1242_p5)
}
  0x62   : > { %s1246_s30 = scalar_lea.vmem %s1603_s8, 64  ;;  %p1860_p12 = pmov %p1859_p6 }
  0x63   : > { %p1247_p1 = scmp.ne.s32.totalorder %s1603_s8, %s1246_s30  ;;  %s1419_s12 = smov [#allocation8]  }
  0x64   : > { %s1251_s23 = sshll.u32 %s1419_s12, 4  ;;  %s1252_s23 = int_to_ptr.vmem [resolvable:$false] %s1251_s23 }
  0x65   : > { %p1249_p0 = pnand %p1247_p1, %p1860_p12  ;;  %s1253_s25 = scalar_lea.vmem %s1252_s23, 128 }
  0x66   : > { %p1254_p6 = scmp.lt.s32.totalorder %s1603_s8, %s1252_s23  ;;  %p1255_p8 = scmp.lt.s32.totalorder %s1253_s25, %s1246_s30 }
  0x67   : > { %p1250_p9 = pneg %p1249_p0 }
  0x68   : > { %p1256_p10 = por %p1255_p8, %p1254_p6 }
  0x6a   : > { %p1257_p13 = pnand %p1256_p10, %p1250_p9 }
  0x6c   : > { %1260 = shalt.err (!%p1257_p13)
}
  0x6d   : > { %1070 = dma.hbm_to_vmem [thread:$0]  (!%p1858_p11), %s1601_s20, 64, %s1603_s8, %s1524_s17  }
  0x6e   : > { %p1861_p7 = scmp.ne.s32.totalorder %s1856_s29, 0 }
  0x6f   : > { %s303_s27 = sand.u32 (!%p1861_p7), 1, %s1553_s19   ;;  %s1654_s9 = sand.u32 (!%p1861_p7), 1, %s1395_s22  }
  0x70   : > { %301 = sbr.rel (%p1861_p7) target bundleno = 501 (0x1f5), region = 36  ;;  %s961_s10 = sshll.u32 (!%p1861_p7), %s1654_s9, 4 }
  0x71   : > { %s304_s11 = scalar_lea.sflag (!%p1861_p7), [#allocation4], %s303_s27  ;;  %s1661_s14 = scalar_lea.vmem (!%p1861_p7), [#allocation3], %s961_s10 }
  0x72   : > { %p1862_p3 = scmp.ne.s32.totalorder (!%p1861_p7), %s1853_s28, 0 }
  0x77   : > { %1370 = dma.done.wait (%p1862_p3), %s304_s11, 256  }
  0x78   : > { %1372 = vsyncadd (%p1862_p3), %s304_s11, 4294967040  ;;  %p1863_p11 = scmp.eq.s32.totalorder %s1553_s19, 0 }
  0x7a   : > { %1374 = dma.done.wait (%p1863_p11), [#allocation7], 8192   ;;  %p1864_p2 = pmov %p1863_p11 }
  0x7b   : > { %s963_s17 = sshll.u32 %s1654_s9, 2 }
  0x7c   : > { %1376 = vsyncadd (%p1864_p2), [#allocation7], 4294959104  ;;  %s1672_s20 = scalar_lea.vmem [#allocation8], %s963_s17 }
  0x7d   : > { %1378 = dma.done.wait (%p1862_p3), %s304_s11, 64  }
  0x7e   : > { %1380 = vsyncadd (%p1862_p3), %s304_s11, 4294967232  ;;  %v1420_v0 = vmov 0.0   ;;  %v381_v1 = vld [vmem:[#allocation6 + $0x18] sm:$0xff]  ;;  %v380_v3 = vld [vmem:[#allocation6 + $0x10] sm:$0xff]  ;;  %p366_p4 = scmp.lt.s32.totalorder %s1403_s24, 1  ;;  %s364_s15 = scalar_lea.vmem [#allocation12], %s1654_s9 }
  0x7f   : > { %605 = vmatprep.mubr.f32.mxu1 %v1420_v0  ;;  %528 = vmatprep.mubr.f32.mxu0 %v1420_v0  ;;  %v385_v2 = vld [vmem:[#allocation6 + $0x38] sm:$0xff]  ;;  %v384_v5 = vld [vmem:[#allocation6 + $0x30] sm:$0xff]  ;;  %v379_v6 = vld [vmem:[#allocation6 + $0x8] sm:$0xff]  ;;  %s975_s18 = sshll.u32 %s1403_s24, 4  ;;  %s358_s0 = scalar_lea.vmem [#allocation10], %s1654_s9 }
  0x80   : > { %v1014_v4 = vpack.c.bf16 %v385_v2, %v381_v1  ;;  %v383_v7 = vld [vmem:[#allocation6 + $0x28] sm:$0xff]  ;;  %v1016_v8 = vpack.c.bf16 %v384_v5, %v380_v3  ;;  %v378_v10 = vld [vmem:[#allocation6] sm:$0xff]  ;;  %v389_v12 = vld [vmem:[#allocation6 + $0x58] sm:$0xff]  ;;  %s367_s28 = scalar_select %p366_p4, %s1403_s24, 1 }
  0x81   : > { %v982_v9 = vpack.c.bf16 %v383_v7, %v379_v6  ;;  %v382_v11 = vld [vmem:[#allocation6 + $0x20] sm:$0xff]  ;;  %v393_v14 = vld [vmem:[#allocation6 + $0x78] sm:$0xff]  ;;  %v388_v15 = vld [vmem:[#allocation6 + $0x50] sm:$0xff]  ;;  %s760_s30 = sshll.u32 %s358_s0, 4  ;;  %s1705_s25 = scalar_lea.hbm %s1833_s5, %s975_s18  ;;  %s1713_s30 = int_to_ptr.vmem [resolvable:$true] %s760_s30 }
  0x82   : > { %1015 = vmatprep.subr.bf16.mxu1 %v1014_v4  ;;  %v984_v13 = vpack.c.bf16 %v382_v11, %v378_v10  ;;  %v392_v16 = vld [vmem:[#allocation6 + $0x70] sm:$0xff]  ;;  %v1018_v17 = vpack.c.bf16 %v393_v14, %v389_v12  ;;  %v387_v19 = vld [vmem:[#allocation6 + $0x48] sm:$0xff]  ;;  %v386_v21 = vld [vmem:[#allocation6 + $0x40] sm:$0xff]  ;;  %s368_s7 = scalar_lea.vmem %s1831_s3, %s367_s28  ;;  %s981_s11 = sshll.u32 %s1403_s24, 8 }
  0x83   : > { %1017 = vmatpush1.bf16.msra.mxu1 %v1016_v8  ;;  %983 = vmatprep.subr.bf16.mxu0 %v982_v9  ;;  %v1020_v18 = vpack.c.bf16 %v392_v16, %v388_v15  ;;  %v391_v20 = vld [vmem:[#allocation6 + $0x68] sm:$0xff]  ;;  %v390_v23 = vld [vmem:[#allocation6 + $0x60] sm:$0xff]  ;;  %v397_v24 = vld [vmem:[#allocation6 + $0x98] sm:$0xff]  ;;  %s1718_s8 = scalar_lea.hbm %s1834_s6, %s975_s18  ;;  %s1261_s18 = scalar_lea.vmem %s1713_s30, 16 }
  0x84   : > { %985 = vmatpush1.bf16.msra.mxu0 %v984_v13  ;;  %v986_v22 = vpack.c.bf16 %v391_v20, %v387_v19  ;;  %v401_v25 = vld [vmem:[#allocation6 + $0xb8] sm:$0xff]  ;;  %1019 = vmatprep.subr.bf16.mxu1 %v1018_v17  ;;  %v988_v26 = vpack.c.bf16 %v390_v23, %v386_v21  ;;  %v396_v28 = vld [vmem:[#allocation6 + $0x90] sm:$0xff]  ;;  %v395_v30 = vld [vmem:[#allocation6 + $0x88] sm:$0xff]  ;;  %p1262_p5 = scmp.ne.s32.totalorder %s1713_s30, %s1261_s18  ;;  %p1865_p1 = scmp.ne.s32.totalorder %s1854_s13, 0 }
  0x85   : > { %v1022_v27 = vpack.c.bf16 %v401_v25, %v397_v24  ;;  %v400_v29 = vld [vmem:[#allocation6 + $0xb0] sm:$0xff]  ;;  %v399_v31 = vld [vmem:[#allocation6 + $0xa8] sm:$0xff]  ;;  %v394_v32 = vld [vmem:[#allocation6 + $0x80] sm:$0xff]  ;;  %s1421_s12 = smov [#allocation10]  }
  0x86   : > { %987 = vmatprep.subr.bf16.mxu0 %v986_v22  ;;  %v398_v33 = vld [vmem:[#allocation6 + $0xa0] sm:$0xff]  ;;  %v1024_v34 = vpack.c.bf16 %v400_v29, %v396_v28  ;;  %v990_v35 = vpack.c.bf16 %v399_v31, %v395_v30  ;;  %v405_v36 = vld [vmem:[#allocation6 + $0xd8] sm:$0xff]  ;;  %v404_v38 = vld [vmem:[#allocation6 + $0xd0] sm:$0xff]  ;;  %p1263_p12 = pnand %p1262_p5, %p1865_p1  ;;  %s1265_s23 = sshll.u32 %s1421_s12, 4  ;;  %s1266_s23 = int_to_ptr.vmem [resolvable:$false] %s1265_s23 }
  0x87   : > { %1021 = vmatpush1.bf16.msra.mxu1 %v1020_v18  ;;  %v409_v37 = vld [vmem:[#allocation6 + $0xf8] sm:$0xff]  ;;  %v992_v39 = vpack.c.bf16 %v398_v33, %v394_v32  ;;  %v408_v41 = vld [vmem:[#allocation6 + $0xf0] sm:$0xff]  ;;  %v403_v42 = vld [vmem:[#allocation6 + $0xc8] sm:$0xff]  ;;  %p1268_p9 = scmp.lt.s32.totalorder %s1713_s30, %s1266_s23 }
  0x88   : > { %989 = vmatpush1.bf16.msra.mxu0 %v988_v26  ;;  %1023 = vmatprep.subr.bf16.mxu1 %v1022_v27  ;;  %v1026_v40 = vpack.c.bf16 %v409_v37, %v405_v36  ;;  %v407_v43 = vld [vmem:[#allocation6 + $0xe8] sm:$0xff]  ;;  %v402_v45 = vld [vmem:[#allocation6 + $0xc0] sm:$0xff]  ;;  %v413_v47 = vld [vmem:[#allocation6 + $0x118] sm:$0xff]  ;;  %v1028_v49 = vpack.c.bf16 %v408_v41, %v404_v38  ;;  %v444_v37 = vlaneseq  ;;  %p1264_p0 = pneg %p1263_p12 }
  0x89   : > { %991 = vmatprep.subr.bf16.mxu0 %v990_v35  ;;  %v994_v44 = vpack.c.bf16 %v407_v43, %v403_v42  ;;  %v406_v46 = vld [vmem:[#allocation6 + $0xe0] sm:$0xff]  ;;  %v417_v48 = vld [vmem:[#allocation6 + $0x138] sm:$0xff]  ;;  %v411_v50 = vld [vmem:[#allocation6 + $0x108] sm:$0xff] }
  0x8a   : > { %v415_v51 = vld [vmem:[#allocation6 + $0x128] sm:$0xff]  ;;  %v996_v52 = vpack.c.bf16 %v406_v46, %v402_v45  ;;  %v1030_v53 = vpack.c.bf16 %v417_v48, %v413_v47  ;;  %v412_v54 = vld [vmem:[#allocation6 + $0x110] sm:$0xff]  ;;  %v410_v56 = vld [vmem:[#allocation6 + $0x100] sm:$0xff]  ;;  %v1689_v38 = vshrl.u32 %v444_v37, 7 }
  0x8b   : > { %1025 = vmatpush1.bf16.msra.mxu1 %v1024_v34  ;;  %v416_v55 = vld [vmem:[#allocation6 + $0x130] sm:$0xff]  ;;  %v998_v57 = vpack.c.bf16 %v415_v51, %v411_v50  ;;  %v414_v58 = vld [vmem:[#allocation6 + $0x120] sm:$0xff]  ;;  %v421_v59 = vld [vmem:[#allocation6 + $0x158] sm:$0xff] }
  0x8c   : > { %993 = vmatpush1.bf16.msra.mxu0 %v992_v39  ;;  %1027 = vmatprep.subr.bf16.mxu1 %v1026_v40  ;;  %v425_v60 = vld [vmem:[#allocation6 + $0x178] sm:$0xff]  ;;  %v419_v61 = vld [vmem:[#allocation6 + $0x148] sm:$0xff]  ;;  %v1032_v63 = vpack.c.bf16 %v416_v55, %v412_v54  ;;  %v1000_v1 = vpack.c.bf16 %v414_v58, %v410_v56  ;;  %v420_v3 = vld [vmem:[#allocation6 + $0x150] sm:$0xff]  ;;  %v454_v39 = vsub.s32 2, %v1689_v38  ;;  %v450_v41 = vsub.s32 1, %v1689_v38 }
  0x8d   : > { %995 = vmatprep.subr.bf16.mxu0 %v994_v44  ;;  %v423_v62 = vld [vmem:[#allocation6 + $0x168] sm:$0xff]  ;;  %v1034_v2 = vpack.c.bf16 %v425_v60, %v421_v59  ;;  %v424_v4 = vld [vmem:[#allocation6 + $0x170] sm:$0xff]  ;;  %v418_v5 = vld [vmem:[#allocation6 + $0x140] sm:$0xff]  ;;  %v446_v55 = vsub.s32 0, %v1689_v38  ;;  %vm663_vm0 = vcmp.lt.s32.totalorder %v1689_v38, 1  ;;  %vm673_vm1 = vcmp.lt.s32.totalorder %v1689_v38, 2 }
  0x8e   : > { %v1002_v6 = vpack.c.bf16 %v423_v62, %v419_v61  ;;  %v422_v7 = vld [vmem:[#allocation6 + $0x160] sm:$0xff]  ;;  %v429_v8 = vld [vmem:[#allocation6 + $0x198] sm:$0xff]  ;;  %v427_v10 = vld [vmem:[#allocation6 + $0x188] sm:$0xff]  ;;  %v1036_v12 = vpack.c.bf16 %v424_v4, %v420_v3  ;;  %vm683_vm2 = vcmp.lt.s32.totalorder %v1689_v38, 4 }
  0x8f   : > { %1029 = vmatpush1.bf16.msra.mxu1 %v1028_v49  ;;  %v433_v9 = vld [vmem:[#allocation6 + $0x1b8] sm:$0xff]  ;;  %v431_v11 = vld [vmem:[#allocation6 + $0x1a8] sm:$0xff]  ;;  %v1004_v13 = vpack.c.bf16 %v422_v7, %v418_v5  ;;  %v428_v15 = vld [vmem:[#allocation6 + $0x190] sm:$0xff]  ;;  %v458_v7 = vsub.s32 3, %v1689_v38 }
  0x90   : > { %997 = vmatpush1.bf16.msra.mxu0 %v996_v52  ;;  %1031 = vmatprep.subr.bf16.mxu1 %v1030_v53  ;;  %v1038_v14 = vpack.c.bf16 %v433_v9, %v429_v8  ;;  %v432_v16 = vld [vmem:[#allocation6 + $0x1b0] sm:$0xff]  ;;  %v426_v17 = vld [vmem:[#allocation6 + $0x180] sm:$0xff]  ;;  %v1006_v18 = vpack.c.bf16 %v431_v11, %v427_v10  ;;  %v437_v20 = vld [vmem:[#allocation6 + $0x1d8] sm:$0xff] }
  0x91   : > { %999 = vmatprep.subr.bf16.mxu0 %v998_v57  ;;  %v430_v19 = vld [vmem:[#allocation6 + $0x1a0] sm:$0xff]  ;;  %v441_v21 = vld [vmem:[#allocation6 + $0x1f8] sm:$0xff]  ;;  %v435_v22 = vld [vmem:[#allocation6 + $0x1c8] sm:$0xff]  ;;  %v1040_v24 = vpack.c.bf16 %v432_v16, %v428_v15 }
  0x92   : > { %v439_v23 = vld [vmem:[#allocation6 + $0x1e8] sm:$0xff]  ;;  %v1008_v25 = vpack.c.bf16 %v430_v19, %v426_v17  ;;  %v1042_v26 = vpack.c.bf16 %v441_v21, %v437_v20  ;;  %v436_v27 = vld [vmem:[#allocation6 + $0x1d0] sm:$0xff]  ;;  %v434_v30 = vld [vmem:[#allocation6 + $0x1c0] sm:$0xff] }
  0x93   : > { %1033 = vmatpush1.bf16.msra.mxu1 %v1032_v63  ;;  %v440_v28 = vld [vmem:[#allocation6 + $0x1f0] sm:$0xff]  ;;  %v1010_v29 = vpack.c.bf16 %v439_v23, %v435_v22  ;;  %v438_v31 = vld [vmem:[#allocation6 + $0x1e0] sm:$0xff]  ;;  %v377_v35 = vld [vmem:[%s1661_s14 + $0x8] sm:$0xff] }
  0x94   : > { %1001 = vmatpush1.bf16.msra.mxu0 %v1000_v1  ;;  %1035 = vmatprep.subr.bf16.mxu1 %v1034_v2  ;;  %v1044_v32 = vpack.c.bf16 %v440_v28, %v436_v27  ;;  %v1012_v33 = vpack.c.bf16 %v438_v31, %v434_v30  ;;  %v376_v34 = vld [vmem:[%s1661_s14] sm:$0xff]  ;;  %v374_v36 = vld [vmem:[%s368_s7] sm:$0x1]  ;;  %s1710_s14 = scalar_lea.vmem [#allocation9], %s961_s10  ;;  %s1723_s7 = scalar_lea.hbm %s1832_s4, %s981_s11 }
  0x95   : > { %1003 = vmatprep.subr.bf16.mxu0 %v1002_v6  ;;  %375 = vst [vmem:[#allocation2] sm:$0x1] %v374_v36  ;;  %v442_v40 = vld [vmem:[%s1672_s20] sm:$0xf]  ;;  %s744_s17 = sshll.u32 %s1710_s14, 4  ;;  %s773_s20 = sshll.u32 %s364_s15, 4  ;;  %s1725_s17 = int_to_ptr.vmem [resolvable:$true] %s744_s17  ;;  %s1727_s20 = int_to_ptr.vmem [resolvable:$true] %s773_s20 }
  0x96   : > { %v455_v42 = vrot.slane %v442_v40, %v454_v39  ;;  %v447_v60 = vrot.slane %v442_v40, %v446_v55  ;;  %v459_v9 = vrot.slane %v442_v40, %v458_v7  ;;  %s1267_s11 = scalar_lea.vmem %s1266_s23, 32 }
  0x97   : > { %1037 = vmatpush1.bf16.msra.mxu1 %v1036_v12  ;;  %p1269_p6 = scmp.lt.s32.totalorder %s1267_s11, %s1261_s18 }
  0x98   : > { %1005 = vmatpush1.bf16.msra.mxu0 %v1004_v13  ;;  %1039 = vmatprep.subr.bf16.mxu1 %v1038_v14 }
  0x99   : > { %1007 = vmatprep.subr.bf16.mxu0 %v1006_v18  ;;  %p1270_p8 = por %p1269_p6, %p1268_p9 }
  0x9b   : > { %1041 = vmatpush1.bf16.msra.mxu1 %v1040_v24  ;;  %p1271_p10 = pnand %p1270_p8, %p1264_p0 }
  0x9c   : > { %1009 = vmatpush1.bf16.msra.mxu0 %v1008_v25  ;;  %1043 = vmatprep.subr.bf16.mxu1 %v1042_v26 }
  0x9d   : > { %1011 = vmatprep.subr.bf16.mxu0 %v1010_v29 }
  0x9f   : > { %1045 = vmatpush1.bf16.msra.mxu1 %v1044_v32 }
  0xa0   : > { %1013 = vmatpush1.bf16.msra.mxu0 %v1012_v33 }
  0xa2   : > { %606 = vmatmul.mubr.f32.vlgmr.msra.gmra.mrb[0].mxu1 %v376_v34 }
  0xa3   : > { %529 = vmatmul.mubr.f32.vlgmr.msra.gmra.mrb[0].mxu0 %v376_v34  ;;  %611 = vmatprep.mubr.f32.mxu1 %v1420_v0 }
  0xa4   : > { %534 = vmatprep.mubr.f32.mxu0 %v1420_v0  ;;  %v451_v0 = vrot.slane %v442_v40, %v450_v41 }
  0xa6   : > { %612 = vmatmul.mubr.f32.gmra.mrb[2].mxu1 %v377_v35 }
  0xa7   : > { %535 = vmatmul.mubr.f32.gmra.mrb[2].mxu0 %v377_v35 }
 0x175   : > { %v607_v43 = vpop.f32.mrb[0].mxu1 }
 0x176   : > { %v608_v44 = vadd.f32 %v607_v43, %v455_v42  ;;  %v609_v45 = vpop.f32.mrb[1].mxu1  ;;  %v530_v46 = vpop.f32.mrb[0].mxu0  ;;  %v971_v43 = vld [vmem:[#allocation2] ss:$0 sm:$0xff] }
 0x177   : > { %v532_v47 = vpop.f32.mrb[1].mxu0  ;;  %v531_v61 = vadd.f32 %v530_v46, %v447_v60  ;;  %v610_v12 = vadd.f32 %v609_v45, %v459_v9 }
 0x178   : > { %v967_v48 = vmul.f32 -1.442695, %v608_v44  ;;  %v533_v49 = vadd.f32 %v532_v47, %v451_v0 }
 0x179   : > { %v613_v50 = vpop.f32.mrb[2].mxu1  ;;  %v969_v19 = vmul.f32 -1.442695, %v610_v12 }
 0x17a   : > { %1141 = vpow2.f32 %v967_v48  ;;  %v965_v51 = vmul.f32 -1.442695, %v533_v49  ;;  %v614_v52 = vadd.f32 %v613_v50, %v455_v42  ;;  %v615_v53 = vpop.f32.mrb[3].mxu1  ;;  %v536_v54 = vpop.f32.mrb[2].mxu0 }
 0x17b   : > { %v538_v56 = vpop.f32.mrb[3].mxu0  ;;  %v537_v2 = vadd.f32 %v536_v54, %v447_v60  ;;  %v616_v16 = vadd.f32 %v615_v53, %v459_v9 }
 0x17c   : > { %1143 = vpow2.f32 %v965_v51  ;;  %v968_v57 = vmul.f32 -1.442695, %v614_v52  ;;  %v539_v58 = vadd.f32 %v538_v56, %v451_v0 }
 0x17d   : > { %v970_v24 = vmul.f32 -1.442695, %v616_v16 }
 0x17e   : > { %1145 = vpow2.f32 %v968_v57  ;;  %v966_v59 = vmul.f32 -1.442695, %v539_v58 }
 0x180   : > { %1147 = vpow2.f32 %v966_v59 }
 0x181   : > { %1149 = vtanh.f32 %v531_v61 }
 0x184   : > { %v1142_v62 = vpop.eup %1141 }
 0x185   : > { %v638_v63 = vadd.f32 1.0, %v1142_v62 }
 0x186   : > { %v1144_v1 = vpop.eup %1143 }
 0x187   : > { %v626_v3 = vadd.f32 1.0, %v1144_v1  ;;  %1151 = vrcp.f32 %v638_v63 }
 0x188   : > { %v1146_v4 = vpop.eup %1145 }
 0x189   : > { %1153 = vrcp.f32 %v626_v3  ;;  %v639_v5 = vadd.f32 1.0, %v1146_v4 }
 0x18a   : > { %v1148_v6 = vpop.eup %1147  ;;  %1155 = vtanh.f32 %v537_v2 }
 0x18b   : > { %1157 = vrcp.f32 %v639_v5  ;;  %v627_v8 = vadd.f32 1.0, %v1148_v6  ;;  %v1150_v10 = vpop.eup %1149 }
 0x18d   : > { %1159 = vrcp.f32 %v627_v8 }
 0x18e   : > { %1161 = vpow2.f32 %v969_v19 }
 0x18f   : > { %1163 = vpow2.f32 %v970_v24 }
 0x191   : > { %v1152_v11 = vpop.eup %1151 }
 0x192   : > { %v661_v18 = vrot.slane %v1152_v11, 7 }
 0x193   : > { %v1154_v13 = vpop.eup %1153 }
 0x194   : > { %v1156_v14 = vpop.eup %1155  ;;  %v656_v15 = vmul.f32 %v1154_v13, %v1150_v10 }
 0x195   : > { %v1158_v17 = vpop.eup %1157 }
 0x196   : > { %v662_v20 = vrot.slane %v1158_v17, 7 }
 0x197   : > { %v1160_v21 = vpop.eup %1159 }
 0x198   : > { %v664_v22 = vsel %vm663_vm0, %v661_v18, %v662_v20  ;;  %v665_v23 = vsel %vm663_vm0, %v662_v20, %v661_v18  ;;  %v657_v25 = vmul.f32 %v1160_v21, %v1156_v14  ;;  %v1162_v39 = vpop.eup %1161 }
 0x199   : > { %v667_v26 = vsel %vm663_vm0, 1.0, %v665_v23  ;;  %v670_v27 = vmul.f32 %v1158_v17, %v664_v22  ;;  %v1164_v44 = vpop.eup %1163  ;;  %v650_v46 = vadd.f32 1.0, %v1162_v39 }
 0x19a   : > { %v669_v28 = vmul.f32 %v1152_v11, %v667_v26  ;;  %v651_v49 = vadd.f32 1.0, %v1164_v44 }
 0x19b   : > { %v672_v29 = vrot.slane %v670_v27, 6  ;;  %1165 = vrcp.f32 %v650_v46 }
 0x19c   : > { %v671_v30 = vrot.slane %v669_v28, 6 }
 0x19e   : > { %v674_v31 = vsel %vm673_vm1, %v671_v30, %v672_v29  ;;  %v675_v32 = vsel %vm673_vm1, %v672_v29, %v671_v30 }
 0x19f   : > { %v677_v33 = vsel %vm673_vm1, 1.0, %v675_v32  ;;  %v680_v34 = vmul.f32 %v674_v31, %v670_v27 }
 0x1a0   : > { %v679_v35 = vmul.f32 %v677_v33, %v669_v28 }
 0x1a1   : > { %v682_v36 = vrot.slane %v680_v34, 4 }
 0x1a2   : > { %v681_v37 = vrot.slane %v679_v35, 4 }
 0x1a4   : > { %v684_v40 = vsel %vm683_vm2, %v681_v37, %v682_v36  ;;  %v685_v41 = vsel %vm683_vm2, %v682_v36, %v681_v37 }
 0x1a5   : > { %v690_v42 = vmul.f32 %v684_v40, %v680_v34  ;;  %v687_v0 = vsel %vm683_vm2, 1.0, %v685_v41  ;;  %v1166_v52 = vpop.eup %1165 }
 0x1a6   : > { %v689_v45 = vmul.f32 %v687_v0, %v679_v35 }
 0x1a8   : > { %v696_v47 = vmul.f32 %v690_v42, %v689_v45  ;;  %v704_v48 = vmul.f32 %v971_v43, %v689_v45 }
 0x1aa   : > { %v705_v50 = vmul.f32 %v971_v43, %v696_v47  ;;  %v707_v38 = vadd.f32 %v704_v48, %v656_v15 }
 0x1ac   : > { %706 = vst [vmem:[#allocation2 - $0x7] sm:$0x80] %v705_v50  ;;  %v708_v51 = vadd.f32 %v705_v50, %v657_v25  ;;  %1167 = vtanh.f32 %v707_v38  ;;  %719 = vst [vmem:[%s364_s15 - $0x7] sm:$0x80] %v707_v38  ;;  %s1732_s15 = scalar_lea.sflag [#allocation11], %s303_s27 }
 0x1ad   : > { %1169 = vrcp.f32 %v651_v49 }
 0x1ae   : > { %1171 = vtanh.f32 %v708_v51 }
 0x1b6   : > { %v1168_v53 = vpop.eup %1167 }
 0x1b7   : > { %v1170_v54 = vpop.eup %1169  ;;  %v711_v55 = vmul.f32 %v1168_v53, %v1166_v52 }
 0x1b8   : > { %v1172_v56 = vpop.eup %1171 }
 0x1b9   : > { %713 = vst [vmem:[%s1710_s14] sm:$0xff] %v711_v55  ;;  %718 = vst [vmem:[%s358_s0 - $0x7] sm:$0x80] %v711_v55  ;;  %v712_v57 = vmul.f32 %v1172_v56, %v1170_v54 }
 0x1ba   : > { %1274 = shalt.err (!%p1271_p10)
}
 0x1bb   : > { %s1275_s19 = scalar_lea.hbm %s1705_s25, 16  ;;  %s1279_s28 = scalar_lea.hbm %s1833_s5, 32 }
 0x1bc   : > { %p1276_p13 = scmp.ne.s32.totalorder %s1705_s25, %s1275_s19  ;;  %p1280_p11 = scmp.lt.u32.totalorder %s1705_s25, %s1833_s5 }
 0x1bd   : > { %p1281_p2 = scmp.lt.u32.totalorder %s1279_s28, %s1275_s19  ;;  %p1283_p5 = scmp.lt.u32.totalorder %s1275_s19, %s1705_s25 }
 0x1be   : > { %p1277_p7 = pnand %p1276_p13, %p1865_p1 }
 0x1bf   : > { %p1282_p4 = por %p1281_p2, %p1280_p11 }
 0x1c0   : > { %p1278_p3 = pneg %p1277_p7 }
 0x1c1   : > { %p1284_p12 = por %p1283_p5, %p1282_p4 }
 0x1c3   : > { %p1285_p0 = pnand %p1284_p12, %p1278_p3 }
 0x1c5   : > { %1288 = shalt.err (!%p1285_p0)
}
 0x1c6   : > { %1055 = dma.vmem_to_hbm [thread:$0]  (%p1865_p1), %s1713_s30, 16, %s1705_s25, %s1732_s15   ;;  %714 = vst [vmem:[%s1710_s14 + $0x8] sm:$0xff] %v712_v57 }
 0x1c7   : > { %s1289_s10 = scalar_lea.vmem %s1727_s20, 16  ;;  %s1422_s18 = smov [#allocation12]  }
 0x1c8   : > { %p1290_p9 = scmp.ne.s32.totalorder %s1727_s20, %s1289_s10  ;;  %s1293_s12 = sshll.u32 %s1422_s18, 4  ;;  %s1294_s12 = int_to_ptr.vmem [resolvable:$false] %s1293_s12 }
 0x1c9   : > { %s1295_s23 = scalar_lea.vmem %s1294_s12, 32  ;;  %p1296_p10 = scmp.lt.s32.totalorder %s1727_s20, %s1294_s12 }
 0x1ca   : > { %p1291_p6 = pnand %p1290_p9, %p1865_p1  ;;  %p1297_p13 = scmp.lt.s32.totalorder %s1295_s23, %s1289_s10 }
 0x1cc   : > { %p1292_p8 = pneg %p1291_p6  ;;  %p1298_p7 = por %p1297_p13, %p1296_p10 }
 0x1ce   : > { %p1299_p3 = pnand %p1298_p7, %p1292_p8 }
 0x1d0   : > { %1302 = shalt.err (!%p1299_p3)
}
 0x1d1   : > { %s1303_s30 = scalar_lea.hbm %s1718_s8, 16  ;;  %s1307_s11 = scalar_lea.hbm %s1834_s6, 32 }
 0x1d2   : > { %p1304_p11 = scmp.ne.s32.totalorder %s1718_s8, %s1303_s30  ;;  %p1308_p5 = scmp.lt.u32.totalorder %s1718_s8, %s1834_s6 }
 0x1d3   : > { %p1309_p12 = scmp.lt.u32.totalorder %s1307_s11, %s1303_s30  ;;  %p1311_p9 = scmp.lt.u32.totalorder %s1303_s30, %s1718_s8 }
 0x1d4   : > { %p1305_p2 = pnand %p1304_p11, %p1865_p1 }
 0x1d5   : > { %p1310_p0 = por %p1309_p12, %p1308_p5 }
 0x1d6   : > { %p1306_p4 = pneg %p1305_p2 }
 0x1d7   : > { %p1312_p6 = por %p1311_p9, %p1310_p0 }
 0x1d9   : > { %p1313_p8 = pnand %p1312_p6, %p1306_p4 }
 0x1db   : > { %1316 = shalt.err (!%p1313_p8)
}
 0x1dc   : > { %1056 = dma.vmem_to_hbm [thread:$0]  (%p1865_p1), %s1727_s20, 16, %s1718_s8, %s1732_s15  }
 0x1dd   : > { %s721_s0 = scalar_lea.sflag [#allocation5], %s1654_s9  ;;  %s1317_s28 = scalar_lea.vmem %s1725_s17, 256 }
 0x1de   : > { %p1318_p10 = scmp.ne.s32.totalorder %s1725_s17, %s1317_s28  ;;  %s1423_s29 = smov [#allocation9]  }
 0x1df   : > { %s1321_s24 = sshll.u32 %s1423_s29, 4  ;;  %s1322_s24 = int_to_ptr.vmem [resolvable:$false] %s1321_s24 }
 0x1e0   : > { %p1319_p13 = pnand %p1318_p10, %p1865_p1  ;;  %s1323_s10 = scalar_lea.vmem %s1322_s24, 512 }
 0x1e1   : > { %p1324_p3 = scmp.lt.s32.totalorder %s1725_s17, %s1322_s24  ;;  %p1325_p11 = scmp.lt.s32.totalorder %s1323_s10, %s1317_s28 }
 0x1e2   : > { %p1320_p7 = pneg %p1319_p13 }
 0x1e3   : > { %p1326_p2 = por %p1325_p11, %p1324_p3 }
 0x1e5   : > { %p1327_p4 = pnand %p1326_p2, %p1320_p7 }
 0x1e7   : > { %1330 = shalt.err (!%p1327_p4)
}
 0x1e8   : > { %s1331_s20 = scalar_lea.hbm %s1723_s7, 256  ;;  %s1335_s18 = scalar_lea.hbm %s1832_s4, 512 }
 0x1e9   : > { %p1332_p5 = scmp.ne.s32.totalorder %s1723_s7, %s1331_s20  ;;  %p1336_p9 = scmp.lt.u32.totalorder %s1723_s7, %s1832_s4 }
 0x1ea   : > { %p1337_p6 = scmp.lt.u32.totalorder %s1335_s18, %s1331_s20  ;;  %p1339_p10 = scmp.lt.u32.totalorder %s1331_s20, %s1723_s7 }
 0x1eb   : > { %p1333_p12 = pnand %p1332_p5, %p1865_p1 }
 0x1ec   : > { %p1338_p8 = por %p1337_p6, %p1336_p9 }
 0x1ed   : > { %p1334_p0 = pneg %p1333_p12 }
 0x1ee   : > { %p1340_p13 = por %p1339_p10, %p1338_p8 }
 0x1f0   : > { %p1341_p7 = pnand %p1340_p13, %p1334_p0 }
 0x1f2   : > { %1344 = shalt.err (!%p1341_p7)
}
 0x1f3   : > { %s1424_s30 = smov 128   ;;  %s1425_s25 = smov 8  }
 0x1f4   : > { %1054 = dma.vmem_to_hbm [thread:$0]  (%p1865_p1), %s1725_s17, 256, %s1723_s7, %s721_s0, %s1424_s30, %s1424_s30, %s1425_s25  }
 0x1f5 PF: > { %s785_s14 = sand.u32 1, %s1391_s21   ;;  %p1866_p3 = scmp.ne.s32.totalorder %s1855_s16, 0 }
 0x1f6   : > { %p1867_p11 = scmp.ge.s32.totalorder %s1411_s26, 2  ;;  %s786_s11 = scalar_lea.sflag [#allocation5], %s785_s14 }
 0x1f8   : > { %p1072_p2 = pnand %p1867_p11, %p1866_p3 }
 0x1fa   : > { %1382 = dma.done.wait (!%p1072_p2), %s786_s11, 256  }
 0x1fb   : > { %1384 = vsyncadd (!%p1072_p2), %s786_s11, 4294967040  ;;  %s1868_s19 = sadd.s32 4294967294, %s1411_s26  }
 0x1fc   : > { %s794_s27 = sand.u32 1, %s1868_s19  }
 0x1fd   : > { %s795_s28 = scalar_lea.sflag [#allocation11], %s794_s27 }
 0x1fe   : > { %1386 = dma.done.wait (!%p1072_p2), %s795_s28, 32  }
 0x1ff   : > { %1388 = vsyncadd (!%p1072_p2), %s795_s28, 4294967264  ;;  %s27_s26 = sadd.s32 1, %s1411_s26   ;;  %s1869_s13 = sld [smem:[#allocation18_spill]] }
 0x200   : > { %p24_p1 = scmp.ge.s32.totalorder %s27_s26, 4   ;;  %s1870_s23 = sld [smem:[#allocation21_spill]] }
 0x201   : > { %s1871_s24 = sld [smem:[#allocation19_spill]]  ;;  %s1872_s25 = sld [smem:[#allocation20_spill]] }
 0x202   : > { %s1873_s21 = smov %s1395_s22  ;;  %26 = sbr.rel (!%p24_p1) target bundleno = 11 (0xb), region = 139 }
 0x205   : > { %s1874_s22 = smov %s1869_s13 }
 0x209   :  { %807 = vsyncpa [#allocation4], 1 }
 0x20a   :  { %809 = vsyncpa [#allocation4 + $0x1], 1 }
 0x20b   :  { %810 = vsyncpa [#allocation7], 1 }
 0x20c   :  { %811 = vsyncpa [#allocation5], 1 }
 0x20d   :  { %813 = vsyncpa [#allocation5 + $0x1], 1 }
 0x20e   :  { %814 = vsyncpa [#allocation11], 1 }
 0x20f   :  { %816 = vsyncpa [#allocation11 + $0x1], 1 }

</bundles_post_ra>
